<compile_context>
chip_gen: v7x
topology: tpu7x:2x2x1
jax: 0.10.0
libtpu: 0.0.40
codegen_flags: <defaults>
</compile_context>

<pallas_src>
import functools

import jax
import jax.numpy as jnp
from jax import lax
from jax.experimental import pallas as pl
from jax.experimental.pallas import tpu as pltpu

FEATURES = 20   # in/out features of the shared Linear and of rand_weight
PAD_F = 128     # lane-dense width for the (VMEM-resident) weights / intermediates
NUM_CORES = 2   # parallel grid axis: both TCs on v7x, harmless serial loop on v5e/v6e


def _round_up(n, m):
    return ((n + m - 1) // m) * m


def _fancy_mlp_kernel(x_ref, a1_ref, c1_ref, wt_ref, b_ref,
                      s_out, q_out, s_acc, q_acc,
                      *, batch, tile_b, tiles_per_core, b_padded):
    c = pl.program_id(0)          # parallel (per-core) axis
    j = pl.program_id(1)          # reduction axis over this core's batch tiles

    @pl.when(j == 0)
    def _init():
        s_acc[...] = jnp.zeros_like(s_acc)
        q_acc[...] = jnp.zeros_like(q_acc)

    # x tile is unpadded (tile_b, 20); the K=20 contraction is padded for free
    # inside the MXU path.  Folded affine: h = relu(linear(x) @ R + 1).
    x = x_ref[...]
    h = jnp.dot(x, a1_ref[...], preferred_element_type=jnp.float32) + c1_ref[...]
    h = jnp.maximum(h, 0.0)
    # h = linear(h)  (pre-transposed, lane-padded weight; padded lanes stay 0)
    h = jnp.dot(h, wt_ref[...], preferred_element_type=jnp.float32) + b_ref[...]

    # Mask batch-padding rows.  `batch`/`b_padded` are static Python ints here
    # (shapes under jit), so this branch is resolved at trace time.
    if b_padded != batch:
        row0 = (c * tiles_per_core + j) * tile_b
        rows = lax.broadcasted_iota(jnp.int32, h.shape, 0) + row0
        h = jnp.where(rows < batch, h, 0.0)

    # Lane/sublane-shaped partial sums (no cross-lane reduce per step).
    h3 = h.reshape(tile_b // 8, 8, PAD_F)
    s_acc[...] += jnp.sum(h3, axis=0)
    # TODO(synk): sum-of-squares is plain f32; extreme inputs could overflow to
    # inf, unlike the (non-terminating) PyTorch loop in that regime.
    q_acc[...] += jnp.sum(h3 * h3, axis=0)

    @pl.when(j == pl.num_programs(1) - 1)
    def _finalize():
        s_out[0] = s_acc[...]
        q_out[0] = q_acc[...]


@functools.partial(jax.jit, static_argnames=("tile_b",))
def fancy_mlp_forward(x, weight, bias, rand_weight, *, tile_b=2048):
    """x: (B, 20) f32, weight: (20, 20), bias: (20,), rand_weight: (20, 20)."""
    B, F = x.shape
    assert F == FEATURES
    f32 = jnp.float32

    # ---- wrapper-side folding & (tiny, weight-only) layout plumbing ----
    w_t = weight.astype(f32).T                       # (20, 20)
    r = rand_weight.astype(f32)
    a1 = w_t @ r                                     # W.T @ R        (20, 20)
    c1 = bias.astype(f32) @ r + 1.0                  # b @ R + 1      (20,)

    a1_p = jnp.zeros((FEATURES, PAD_F), f32).at[:, :FEATURES].set(a1)
    wt_p = jnp.zeros((PAD_F, PAD_F), f32).at[:FEATURES, :FEATURES].set(w_t)
    c1_p = jnp.zeros((1, PAD_F), f32).at[0, :FEATURES].set(c1)
    b_p = jnp.zeros((1, PAD_F), f32).at[0, :FEATURES].set(bias.astype(f32))

    # Batch tiling: (NUM_CORES, tiles_per_core) grid; x is only batch-padded to
    # a tile multiple, never lane-padded.
    tile_b = min(tile_b, _round_up(B, 8))
    num_tiles = -(-B // tile_b)
    tiles_per_core = -(-num_tiles // NUM_CORES)
    b_padded = NUM_CORES * tiles_per_core * tile_b
    x_p = x.astype(f32)
    if b_padded != B:
        x_p = jnp.zeros((b_padded, FEATURES), f32).at[:B, :].set(x_p)

    kernel = functools.partial(
        _fancy_mlp_kernel, batch=B, tile_b=tile_b,
        tiles_per_core=tiles_per_core, b_padded=b_padded)

    s_parts, q_parts = pl.pallas_call(
        kernel,
        out_shape=(jax.ShapeDtypeStruct((NUM_CORES, 8, PAD_F), f32),
                   jax.ShapeDtypeStruct((NUM_CORES, 8, PAD_F), f32)),
        grid_spec=pltpu.PrefetchScalarGridSpec(
            num_scalar_prefetch=0,
            grid=(NUM_CORES, tiles_per_core),
            in_specs=[
                pl.BlockSpec((tile_b, FEATURES),
                             lambda c, j: (c * tiles_per_core + j, 0)),  # x tiles
                pl.BlockSpec((FEATURES, PAD_F), lambda c, j: (0, 0)),    # A1 (resident)
                pl.BlockSpec((1, PAD_F), lambda c, j: (0, 0)),           # c1 (resident)
                pl.BlockSpec((PAD_F, PAD_F), lambda c, j: (0, 0)),       # W.T (resident)
                pl.BlockSpec((1, PAD_F), lambda c, j: (0, 0)),           # b   (resident)
            ],
            out_specs=(
                pl.BlockSpec((1, 8, PAD_F), lambda c, j: (c, 0, 0)),     # per-core sum
                pl.BlockSpec((1, 8, PAD_F), lambda c, j: (c, 0, 0)),     # per-core sumsq
            ),
            scratch_shapes=[
                pltpu.VMEM((8, PAD_F), f32),   # running lane-shaped sum
                pltpu.VMEM((8, PAD_F), f32),   # running lane-shaped sum of squares
            ],
        ),
        compiler_params=pltpu.CompilerParams(
            dimension_semantics=("parallel", "arbitrary"),
        ),
    )(x_p, a1_p, c1_p, wt_p, b_p)

    # ---- tiny scalar epilogue, fused into the same jit dispatch ----
    total = jnp.sum(s_parts)
    norm = jnp.sqrt(jnp.sum(q_parts))

    # while x.norm() > 1: x /= 2  -> exact closed-form power-of-two scale.
    # norm = mant * 2**expo with mant in [0.5, 1); halvings k = expo (or expo-1
    # when norm is an exact power of two), clamped at 0.
    mant, expo = jnp.frexp(norm)
    k = jnp.where(mant == 0.5, expo - 1, expo)
    k = jnp.maximum(k, 0)
    scale = jnp.exp2(-k.astype(jnp.float32))

    # if x.norm() < 0.8: x *= 10   (norm after halvings = norm * scale, exact)
    scale = jnp.where(norm * scale < 0.8, scale * 10.0, scale)

    # return x.sum()  (scale * sum; exact for the power-of-two part)
    return total * scale


def reference_forward(x, weight, bias, rand_weight):
    """Pure-JAX, literal translation of the PyTorch forward (eager)."""
    h = x @ weight.T + bias
    h = jnp.maximum(h @ rand_weight + 1.0, 0.0)
    h = h @ weight.T + bias
    while float(jnp.linalg.norm(h)) > 1.0:
        h = h / 2.0
    if float(jnp.linalg.norm(h)) < 0.8:
        h = h * 10.0
    return jnp.sum(h)


if __name__ == "__main__":
    key = jax.random.PRNGKey(0)
    k_w, k_b, k_r, k_x = jax.random.split(key, 4)

    bound = 1.0 / float(jnp.sqrt(jnp.float32(FEATURES)))
    weight = jax.random.uniform(k_w, (FEATURES, FEATURES), jnp.float32,
                                minval=-bound, maxval=bound)
    bias = jax.random.uniform(k_b, (FEATURES,), jnp.float32,
                              minval=-bound, maxval=bound)
    rand_weight = jax.random.uniform(k_r, (FEATURES, FEATURES), jnp.float32,
                                     minval=0.0, maxval=1.0)   # torch.rand

    batch = 2
    x = jax.random.normal(k_x, (batch, FEATURES), dtype=jnp.float32)

    out = jax.block_until_ready(fancy_mlp_forward(x, weight, bias, rand_weight))
    ref = reference_forward(x, weight, bias, rand_weight)

    assert out.shape == ()
    assert jnp.allclose(out, ref, atol=2e-3, rtol=2e-3), (out, ref)

    print("KERNEL_OK")
</pallas_src>

<mosaic_0001>
module attributes {stable_mosaic.version = 11 : i64} {
  func.func @_fancy_mlp_kernel(%arg0: i32, %arg1: i32, %arg2: memref<8x20xf32, #tpu.memory_space<vmem>>, %arg3: memref<20x128xf32, #tpu.memory_space<vmem>>, %arg4: memref<1x128xf32, #tpu.memory_space<vmem>>, %arg5: memref<128x128xf32, #tpu.memory_space<vmem>>, %arg6: memref<1x128xf32, #tpu.memory_space<vmem>>, %arg7: memref<1x8x128xf32, #tpu.memory_space<vmem>>, %arg8: memref<1x8x128xf32, #tpu.memory_space<vmem>>, %arg9: memref<8x128xf32, #tpu.memory_space<vmem>>, %arg10: memref<8x128xf32, #tpu.memory_space<vmem>>) attributes {dimension_semantics = [#tpu.dimension_semantics<parallel>, #tpu.dimension_semantics<arbitrary>], iteration_bounds = array<i64: 2, 1>, scalar_prefetch = 0 : i64, scratch_operands = 2 : i64, tpu.core_type = #tpu.core_type<tc>, window_params = [{transform_indices = @transform_0, window_bounds = array<i64: 8, 20>}, {pipeline_mode = #tpu.pipeline_mode<synchronous>, transform_indices = @transform_1, window_bounds = array<i64: 20, 128>}, {pipeline_mode = #tpu.pipeline_mode<synchronous>, transform_indices = @transform_2, window_bounds = array<i64: 1, 128>}, {pipeline_mode = #tpu.pipeline_mode<synchronous>, transform_indices = @transform_3, window_bounds = array<i64: 128, 128>}, {pipeline_mode = #tpu.pipeline_mode<synchronous>, transform_indices = @transform_4, window_bounds = array<i64: 1, 128>}, {transform_indices = @transform_5, window_bounds = array<i64: 1, 8, 128>}, {transform_indices = @transform_6, window_bounds = array<i64: 1, 8, 128>}]} {
    %c0_i32 = arith.constant 0 : i32
    %0 = arith.cmpi eq, %arg1, %c0_i32 : i32
    %1 = arith.extui %0 : i1 to i32
    %c0_i32_0 = arith.constant 0 : i32
    %2 = arith.cmpi ne, %1, %c0_i32_0 : i32
    scf.if %2 {
      %cst_25 = arith.constant 0.000000e+00 : f32
      %39 = vector.broadcast %cst_25 : f32 to vector<8x128xf32>
      %c0_26 = arith.constant 0 : index
      %c0_27 = arith.constant 0 : index
      %40 = vector.load %arg9[%c0_26, %c0_27] : memref<8x128xf32, #tpu.memory_space<vmem>>, vector<8x128xf32>
      tpu.vector_store %arg9[%c0_26, %c0_27], %39 {strides = array<i32>} : memref<8x128xf32, #tpu.memory_space<vmem>>, vector<8x128xf32>,
      %cst_28 = arith.constant 0.000000e+00 : f32
      %41 = vector.broadcast %cst_28 : f32 to vector<8x128xf32>
      %c0_29 = arith.constant 0 : index
      %c0_30 = arith.constant 0 : index
      %42 = vector.load %arg10[%c0_29, %c0_30] : memref<8x128xf32, #tpu.memory_space<vmem>>, vector<8x128xf32>
      tpu.vector_store %arg10[%c0_29, %c0_30], %41 {strides = array<i32>} : memref<8x128xf32, #tpu.memory_space<vmem>>, vector<8x128xf32>,
    } else {
    }
    %c0 = arith.constant 0 : index
    %c0_1 = arith.constant 0 : index
    %3 = vector.load %arg2[%c0, %c0_1] : memref<8x20xf32, #tpu.memory_space<vmem>>, vector<8x20xf32>
    %c0_2 = arith.constant 0 : index
    %c0_3 = arith.constant 0 : index
    %4 = vector.load %arg3[%c0_2, %c0_3] : memref<20x128xf32, #tpu.memory_space<vmem>>, vector<20x128xf32>
    %cst = arith.constant dense<0.000000e+00> : vector<8x128xf32>
    %5 = tpu.matmul %3, %4, %cst {dimension_numbers = #tpu.dot_dimension_numbers<[1], [0], [0], [1], [0, 0, 1, 1], [], []>} : vector<8x20xf32>, vector<20x128xf32>, vector<8x128xf32> -> vector<8x128xf32>
    %c0_4 = arith.constant 0 : index
    %c0_5 = arith.constant 0 : index
    %6 = vector.load %arg4[%c0_4, %c0_5] : memref<1x128xf32, #tpu.memory_space<vmem>>, vector<1x128xf32>
    %7 = vector.broadcast %6 : vector<1x128xf32> to vector<8x128xf32>
    %8 = arith.addf %5, %7 : vector<8x128xf32>
    %cst_6 = arith.constant 0.000000e+00 : f32
    %9 = vector.broadcast %cst_6 : f32 to vector<8x128xf32>
    %10 = arith.maximumf %8, %9 : vector<8x128xf32>
    %c0_7 = arith.constant 0 : index
    %c0_8 = arith.constant 0 : index
    %11 = vector.load %arg5[%c0_7, %c0_8] : memref<128x128xf32, #tpu.memory_space<vmem>>, vector<128x128xf32>
    %cst_9 = arith.constant dense<0.000000e+00> : vector<8x128xf32>
    %12 = tpu.matmul %10, %11, %cst_9 {dimension_numbers = #tpu.dot_dimension_numbers<[1], [0], [0], [1], [0, 0, 1, 1], [], []>} : vector<8x128xf32>, vector<128x128xf32>, vector<8x128xf32> -> vector<8x128xf32>
    %c0_10 = arith.constant 0 : index
    %c0_11 = arith.constant 0 : index
    %13 = vector.load %arg6[%c0_10, %c0_11] : memref<1x128xf32, #tpu.memory_space<vmem>>, vector<1x128xf32>
    %14 = vector.broadcast %13 : vector<1x128xf32> to vector<8x128xf32>
    %15 = arith.addf %12, %14 : vector<8x128xf32>
    %c1_i32 = arith.constant 1 : i32
    %16 = arith.muli %arg0, %c1_i32 : i32
    %17 = arith.addi %16, %arg1 : i32
    %c8_i32 = arith.constant 8 : i32
    %18 = arith.muli %17, %c8_i32 : i32
    %19 = tpu.iota {dimensions = array<i32: 0>} : vector<8x128xi32>
    %20 = vector.broadcast %18 : i32 to vector<8x128xi32>
    %21 = arith.addi %19, %20 : vector<8x128xi32>
    %c2_i32 = arith.constant 2 : i32
    %22 = vector.broadcast %c2_i32 : i32 to vector<8x128xi32>
    %23 = arith.cmpi slt, %21, %22 : vector<8x128xi32>
    %cst_12 = arith.constant 0.000000e+00 : f32
    %24 = vector.broadcast %cst_12 : f32 to vector<8x128xf32>
    %25 = arith.select %23, %15, %24 : vector<8x128xi1>, vector<8x128xf32>
    %26 = vector.shape_cast %25 : vector<8x128xf32> to vector<1x8x128xf32>
    %c0_13 = arith.constant 0 : index
    %c0_14 = arith.constant 0 : index
    %27 = vector.load %arg9[%c0_13, %c0_14] : memref<8x128xf32, #tpu.memory_space<vmem>>, vector<8x128xf32>
    %cst_15 = arith.constant dense<0.000000e+00> : vector<8x128xf32>
    %28 = vector.multi_reduction <add>, %26, %cst_15 [0] : vector<1x8x128xf32> to vector<8x128xf32>
    %29 = arith.addf %27, %28 : vector<8x128xf32>
    %c0_16 = arith.constant 0 : index
    %c0_17 = arith.constant 0 : index
    %30 = vector.load %arg9[%c0_16, %c0_17] : memref<8x128xf32, #tpu.memory_space<vmem>>, vector<8x128xf32>
    tpu.vector_store %arg9[%c0_16, %c0_17], %29 {strides = array<i32>} : memref<8x128xf32, #tpu.memory_space<vmem>>, vector<8x128xf32>,
    %c0_18 = arith.constant 0 : index
    %c0_19 = arith.constant 0 : index
    %31 = vector.load %arg10[%c0_18, %c0_19] : memref<8x128xf32, #tpu.memory_space<vmem>>, vector<8x128xf32>
    %32 = arith.mulf %26, %26 : vector<1x8x128xf32>
    %cst_20 = arith.constant dense<0.000000e+00> : vector<8x128xf32>
    %33 = vector.multi_reduction <add>, %32, %cst_20 [0] : vector<1x8x128xf32> to vector<8x128xf32>
    %34 = arith.addf %31, %33 : vector<8x128xf32>
    %c0_21 = arith.constant 0 : index
    %c0_22 = arith.constant 0 : index
    %35 = vector.load %arg10[%c0_21, %c0_22] : memref<8x128xf32, #tpu.memory_space<vmem>>, vector<8x128xf32>
    tpu.vector_store %arg10[%c0_21, %c0_22], %34 {strides = array<i32>} : memref<8x128xf32, #tpu.memory_space<vmem>>, vector<8x128xf32>,
    %c0_i32_23 = arith.constant 0 : i32
    %36 = arith.cmpi eq, %arg1, %c0_i32_23 : i32
    %37 = arith.extui %36 : i1 to i32
    %c0_i32_24 = arith.constant 0 : i32
    %38 = arith.cmpi ne, %37, %c0_i32_24 : i32
    scf.if %38 {
      %c0_25 = arith.constant 0 : index
      %c0_26 = arith.constant 0 : index
      %39 = vector.load %arg9[%c0_25, %c0_26] : memref<8x128xf32, #tpu.memory_space<vmem>>, vector<8x128xf32>
      %c0_27 = arith.constant 0 : index
      %c0_28 = arith.constant 0 : index
      %c0_29 = arith.constant 0 : index
      %40 = vector.load %arg7[%c0_27, %c0_28, %c0_29] : memref<1x8x128xf32, #tpu.memory_space<vmem>>, vector<1x8x128xf32>
      %41 = vector.shape_cast %40 : vector<1x8x128xf32> to vector<8x128xf32>
      %42 = vector.shape_cast %39 : vector<8x128xf32> to vector<1x8x128xf32>
      tpu.vector_store %arg7[%c0_27, %c0_28, %c0_29], %42 {strides = array<i32>} : memref<1x8x128xf32, #tpu.memory_space<vmem>>, vector<1x8x128xf32>,
      %c0_30 = arith.constant 0 : index
      %c0_31 = arith.constant 0 : index
      %43 = vector.load %arg10[%c0_30, %c0_31] : memref<8x128xf32, #tpu.memory_space<vmem>>, vector<8x128xf32>
      %c0_32 = arith.constant 0 : index
      %c0_33 = arith.constant 0 : index
      %c0_34 = arith.constant 0 : index
      %44 = vector.load %arg8[%c0_32, %c0_33, %c0_34] : memref<1x8x128xf32, #tpu.memory_space<vmem>>, vector<1x8x128xf32>
      %45 = vector.shape_cast %44 : vector<1x8x128xf32> to vector<8x128xf32>
      %46 = vector.shape_cast %43 : vector<8x128xf32> to vector<1x8x128xf32>
      tpu.vector_store %arg8[%c0_32, %c0_33, %c0_34], %46 {strides = array<i32>} : memref<1x8x128xf32, #tpu.memory_space<vmem>>, vector<1x8x128xf32>,
    } else {
    }
    return
  }
  func.func @transform_0(%arg0: i32, %arg1: i32) -> (i32, i32) {
    %c1_i32 = arith.constant 1 : i32
    %0 = arith.muli %arg0, %c1_i32 : i32
    %1 = arith.addi %0, %arg1 : i32
    %c0_i32 = arith.constant 0 : i32
    %c0_i32_0 = arith.constant 0 : i32
    return %1, %c0_i32 : i32, i32
  }
  func.func @transform_1(%arg0: i32, %arg1: i32) -> (i32, i32) {
    %c0_i32 = arith.constant 0 : i32
    %c0_i32_0 = arith.constant 0 : i32
    %c0_i32_1 = arith.constant 0 : i32
    return %c0_i32, %c0_i32_0 : i32, i32
  }
  func.func @transform_2(%arg0: i32, %arg1: i32) -> (i32, i32) {
    %c0_i32 = arith.constant 0 : i32
    %c0_i32_0 = arith.constant 0 : i32
    %c0_i32_1 = arith.constant 0 : i32
    return %c0_i32, %c0_i32_0 : i32, i32
  }
  func.func @transform_3(%arg0: i32, %arg1: i32) -> (i32, i32) {
    %c0_i32 = arith.constant 0 : i32
    %c0_i32_0 = arith.constant 0 : i32
    %c0_i32_1 = arith.constant 0 : i32
    return %c0_i32, %c0_i32_0 : i32, i32
  }
  func.func @transform_4(%arg0: i32, %arg1: i32) -> (i32, i32) {
    %c0_i32 = arith.constant 0 : i32
    %c0_i32_0 = arith.constant 0 : i32
    %c0_i32_1 = arith.constant 0 : i32
    return %c0_i32, %c0_i32_0 : i32, i32
  }
  func.func @transform_5(%arg0: i32, %arg1: i32) -> (i32, i32, i32) {
    %c0_i32 = arith.constant 0 : i32
    %c0_i32_0 = arith.constant 0 : i32
    %c0_i32_1 = arith.constant 0 : i32
    return %arg0, %c0_i32, %c0_i32_0 : i32, i32, i32
  }
  func.func @transform_6(%arg0: i32, %arg1: i32) -> (i32, i32, i32) {
    %c0_i32 = arith.constant 0 : i32
    %c0_i32_0 = arith.constant 0 : i32
    %c0_i32_1 = arith.constant 0 : i32
    return %arg0, %c0_i32, %c0_i32_0 : i32, i32, i32
  }
}

</mosaic_0001>

<bundles_post_ra>
// kernel: fancy_mlp_forward.1
= control target key start
LH: loop header
LB: loop body
LE: loop exit
PB: predicated region body
PF: predicated region fallthrough
CT: control target
= control target key end

     0   :  { %s778_s21 = smov 0   ;;  %s780_s22 = smov 0   ;;  %s887_s0 = inlined_call_operand.vmem [shape: f32[16,20], index: 0, kind: input, shape index: {}]   ;;  %s888_s1 = inlined_call_operand.vmem [shape: f32[20,128], index: 1, kind: input, shape index: {}]   ;;  %s889_s2 = inlined_call_operand.vmem [shape: f32[1,128], index: 2, kind: input, shape index: {}]   ;;  %s890_s3 = inlined_call_operand.vmem [shape: f32[128,128], index: 3, kind: input, shape index: {}]   ;;  %s891_s4 = inlined_call_operand.vmem [shape: f32[1,128], index: 4, kind: input, shape index: {}]   ;;  %s892_s5 = inlined_call_operand.vmem [shape: f32[2,8,128], index: 5, kind: output, shape index: {0}]   ;;  %s893_s6 = inlined_call_operand.vmem [shape: f32[2,8,128], index: 6, kind: output, shape index: {1}]  }
   0x1   :  { %s782_s23 = smov 0  }
   0x2 LB: > { %s29_s24 = sadd.s32 1, %s734_s22  ;;  %p586_p0 = scmp.ge.s32.totalorder %s738_s23, 1  ;;  %s738_s23 = sphi %s782_s23, %s17_s23   ;;  %s734_s22 = sphi %s780_s22, %s895_s22   ;;  %s730_s21 = sphi %s778_s21, %s894_s21  }
   0x3   : > { %p31_p1 = scmp.ge.s32.totalorder %s29_s24, 2  ;;  %p230_p2 = scmp.lt.s32.totalorder %s738_s23, 3 }
   0x5   : > { %s897_s24 = smov (%p31_p1, %s29_s24), 0  ;;  %p231_p3 = pnand %p586_p0, %p230_p2 }
   0x6   : > { %v284_v0 = vld [vmem:[%s888_s1] sm:$0xff] (!%p231_p3)  ;;  %v285_v1 = vld [vmem:[%s888_s1 + $0x8] sm:$0xff] (!%p231_p3)  ;;  %v740_v2 = vmov (!%p231_p3), 0.0|0.0   ;;  %p264_p4 = scmp.lt.s32.totalorder (!%p231_p3), %s730_s21, 1  ;;  %vm741_vm0 = vmmov (!%p231_p3), 0   ;;  %v742_v6 = vmov (!%p231_p3), 0.0   ;;  %v468_v36 = vlaneseq (!%p231_p3) }
   0x7   : > { %234 = sbr.rel (%p231_p3) target bundleno = 453 (0x1c5), region = 40  ;;  %662 = vmatprep.subr.bf16.mxu0 (!%p231_p3), %v740_v2  ;;  %v663_v3 = vpack.c.bf16 (!%p231_p3), %v285_v1, %v284_v0  ;;  %665 = vmatprep.subr.bf16.mxu1 (!%p231_p3), %v740_v2  ;;  %v373_v4 = vld [vmem:[%s890_s3] sm:$0xff] (!%p231_p3)  ;;  %v374_v5 = vld [vmem:[%s890_s3 + $0x8] sm:$0xff] (!%p231_p3)  ;;  %v375_v8 = vld [vmem:[%s890_s3 + $0x10] sm:$0xff] (!%p231_p3)  ;;  %vm298_vm1 = vcmask (!%p231_p3), 1043456   ;;  %vm294_vm2 = vcmask (!%p231_p3), 162816  }
   0x8   : > { %624 = vmatprep.mubr.msk.f32.mxu0 (!%p231_p3), %vm741_vm0, %v742_v6  ;;  %v666_v7 = vpack.c.bf16 (!%p231_p3), %v374_v5, %v373_v4  ;;  %v376_v9 = vld [vmem:[%s890_s3 + $0x18] sm:$0xff] (!%p231_p3)  ;;  %659 = vmatprep.mubr.msk.f32.mxu1 (!%p231_p3), %vm741_vm0, %v742_v6  ;;  %v286_v10 = vld [vmem:[%s888_s1 + $0x10] sm:$0xf] (!%p231_p3)  ;;  %v377_v12 = vld [vmem:[%s890_s3 + $0x20] sm:$0xff] (!%p231_p3)  ;;  %s594_s7 = sshll.u32 (!%p231_p3), %s730_s21, 3  ;;  %v469_v37 = vshrl.u32 (!%p231_p3), %v468_v36, 7 }
   0x9   : > { %664 = vmatpush3.bf16.msra.mxu0 (!%p231_p3), %v663_v3  ;;  %v669_v11 = vpack.c.bf16 (!%p231_p3), %v376_v9, %v375_v8  ;;  %v378_v13 = vld [vmem:[%s890_s3 + $0x28] sm:$0xff] (!%p231_p3)  ;;  %v379_v16 = vld [vmem:[%s890_s3 + $0x30] sm:$0xff] (!%p231_p3)  ;;  %v380_v17 = vld [vmem:[%s890_s3 + $0x38] sm:$0xff] (!%p231_p3)  ;;  %v470_v38 = vstv (!%p231_p3), %s594_s7 }
   0xa   : > { %622 = vmatprep.subr.mxu0 (!%p231_p3), %v742_v6  ;;  %667 = vmatpush3.bf16.msra.mxu1 (!%p231_p3), %v666_v7  ;;  %v672_v15 = vpack.c.bf16 (!%p231_p3), %v378_v13, %v377_v12  ;;  %v675_v18 = vpack.c.bf16 (!%p231_p3), %v380_v17, %v379_v16  ;;  %v381_v19 = vld [vmem:[%s890_s3 + $0x40] sm:$0xff] (!%p231_p3)  ;;  %v382_v20 = vld [vmem:[%s890_s3 + $0x48] sm:$0xff] (!%p231_p3)  ;;  %v383_v22 = vld [vmem:[%s890_s3 + $0x50] sm:$0xff] (!%p231_p3)  ;;  %v471_v39 = vadd.s32 (!%p231_p3), %v470_v38, %v469_v37 }
   0xb   : > { %668 = vmatprep.subr.bf16.mxu1 (!%p231_p3), %v740_v2  ;;  %v678_v21 = vpack.c.bf16 (!%p231_p3), %v382_v20, %v381_v19  ;;  %v384_v23 = vld [vmem:[%s890_s3 + $0x58] sm:$0xff] (!%p231_p3)  ;;  %v385_v25 = vld [vmem:[%s890_s3 + $0x60] sm:$0xff] (!%p231_p3)  ;;  %v386_v26 = vld [vmem:[%s890_s3 + $0x68] sm:$0xff] (!%p231_p3) }
   0xc   : > { %v681_v24 = vpack.c.bf16 (!%p231_p3), %v384_v23, %v383_v22  ;;  %v684_v27 = vpack.c.bf16 (!%p231_p3), %v386_v26, %v385_v25  ;;  %v387_v28 = vld [vmem:[%s890_s3 + $0x70] sm:$0xff] (!%p231_p3)  ;;  %v388_v29 = vld [vmem:[%s890_s3 + $0x78] sm:$0xff] (!%p231_p3)  ;;  %v590_v31 = vld [vmem:[%s889_s2] ss:$0 sm:$0xff] (!%p231_p3)  ;;  %vm472_vm3 = vcmp.lt.s32.totalorder (!%p231_p3), %v471_v39, 2 }
   0xd   : > { %623 = vmatpush3.msk.msra.mxu0 (!%p231_p3), %vm298_vm1, %v286_v10  ;;  %v687_v30 = vpack.c.bf16 (!%p231_p3), %v388_v29, %v387_v28  ;;  %v593_v40 = vld [vmem:[%s891_s4] ss:$0 sm:$0xff] (!%p231_p3) }
   0xe   : > { %s265_s13 = scalar_select %p264_p4, %s730_s21, 1  ;;  %670 = vmatpush3.bf16.msra.mxu1 %v669_v11 }
   0xf   : > { %671 = vmatprep.subr.bf16.mxu1 %v740_v2 }
  0x10   : > { %s821_s16 = sshll.u32 %s265_s13, 3 }
  0x11   : > { %s267_s27 = scalar_lea.vmem %s887_s0, %s821_s16  ;;  %s272_s12 = scalar_lea.vmem %s892_s5, %s821_s16 }
  0x12   : > { %v283_v14 = vld [vmem:[%s267_s27] sm:$0xff]  ;;  %673 = vmatpush3.bf16.msra.mxu1 %v672_v15  ;;  %s276_s15 = scalar_lea.vmem %s893_s6, %s821_s16 }
  0x13   : > { %625 = vmatmul.mubr.msk.f32.vlgmr.msra.gmra.mrb[0].mxu0 %vm294_vm2, %v283_v14  ;;  %674 = vmatprep.subr.bf16.mxu1 %v740_v2 }
  0x16   : > { %676 = vmatpush3.bf16.msra.mxu1 %v675_v18 }
  0x17   : > { %677 = vmatprep.subr.bf16.mxu1 %v740_v2 }
  0x1a   : > { %679 = vmatpush3.bf16.msra.mxu1 %v678_v21 }
  0x1b   : > { %680 = vmatprep.subr.bf16.mxu1 %v740_v2 }
  0x1e   : > { %682 = vmatpush3.bf16.msra.mxu1 %v681_v24 }
  0x1f   : > { %683 = vmatprep.subr.bf16.mxu1 %v740_v2 }
  0x22   : > { %685 = vmatpush3.bf16.msra.mxu1 %v684_v27 }
  0x23   : > { %686 = vmatprep.subr.bf16.mxu1 %v740_v2 }
  0x26   : > { %688 = vmatpush3.bf16.msra.mxu1 %v687_v30 }
  0xe6   : > { %v368_v32 = vpop.f32.mrb[0].mxu0 }
  0xe7   : > { %v369_v33 = vadd.f32 %v590_v31, %v368_v32  ;;  %v626_v34 = vpop.f32.mrb[1].mxu0 }
  0xe9   : > { %v372_v35 = vmax.f32 %v369_v33, 0.0 }
  0xeb   : > { %660 = vmatmul.mubr.f32.vlgmr.msra.gmra.mrb[0].mxu1 %v372_v35 }
 0x1be   : > { %v462_v41 = vpop.f32.mrb[0].mxu1 }
 0x1bf   : > { %v463_v42 = vadd.f32 %v593_v40, %v462_v41  ;;  %v661_v43 = vpop.f32.mrb[1].mxu1 }
 0x1c1   : > { %v473_v44 = vsel %vm472_vm3, %v463_v42, 0.0 }
 0x1c2   : > { %v479_v45 = vmul.f32 %v473_v44, %v473_v44  ;;  %487 = vst [vmem:[%s272_s12] sm:$0xff] %v473_v44 }
 0x1c4   : > { %489 = vst [vmem:[%s276_s15] sm:$0xff] %v479_v45 }
 0x1c5 PF: > { %s17_s23 = sadd.s32 1, %s738_s23   ;;  %s894_s21 = smov %s734_s22 }
 0x1c6   : > { %p14_p5 = scmp.ge.s32.totalorder %s17_s23, 4   ;;  %s895_s22 = smov %s897_s24 }
 0x1c8   :  { %16 = sbr.rel (!%p14_p5) target bundleno = 2 (0x2), region = 90 }

</bundles_post_ra>
